<compile_context>
chip_gen: v7x
topology: tpu7x:2x2x1
jax: 0.10.0
libtpu: 0.0.40
codegen_flags: <defaults>
</compile_context>

<pallas_src>
import functools

import jax
import jax.numpy as jnp
from jax.experimental import pallas as pl
from jax.experimental.pallas import tpu as pltpu


def _round_up(x, m):
    return ((x + m - 1) // m) * m


def _vmem_budget():
    cap = 64 * 1024 * 1024
    try:
        cap = int(pltpu.get_tpu_info().vmem_capacity_bytes)
    except Exception:
        pass
    # ~3/4 of physical VMEM: 96 MiB on v5e/v6e (128 MiB), 48 MiB on v7x (64 MiB).
    return max(32 * 1024 * 1024, min((cap * 3) // 4, 100 * 1024 * 1024))


def _compiler_params(vmem_limit):
    return pltpu.CompilerParams(
        dimension_semantics=("parallel",),
        vmem_limit_bytes=vmem_limit,
    )


# --------------------------- Pallas kernels ---------------------------------

def _synth_kernel(ss_ref, ang_ref, binv_ref, o_ref):
    """Fused: spec = S * angles (bf16) ; frames = spec @ [inv_re ; inv_im] (bf16 MXU, f32 acc)."""
    spec = ss_ref[...] * ang_ref[...]                       # (tm, 2FP) bf16
    o_ref[...] = jnp.dot(spec, binv_ref[...],
                         preferred_element_type=jnp.float32)


def synth_frames(SS_rows, angles, inv_basis, *, tm, vmem_limit):
    """(MP, 2FP) mag|mag * re|im angles -> (MP, NFP) windowed time-domain frames (iSTFT core)."""
    MP, FP2 = SS_rows.shape
    NFP = inv_basis.shape[1]
    row2 = pl.BlockSpec((tm, FP2), lambda i: (i, 0))
    return pl.pallas_call(
        _synth_kernel,
        out_shape=jax.ShapeDtypeStruct((MP, NFP), jnp.float32),
        grid=(MP // tm,),
        in_specs=[row2, row2,
                  pl.BlockSpec((FP2, NFP), lambda i: (0, 0))],   # VMEM-resident basis
        out_specs=pl.BlockSpec((tm, NFP), lambda i: (i, 0)),
        compiler_params=_compiler_params(vmem_limit),
    )(SS_rows, angles, inv_basis)


def _make_analysis_kernel(momentum, fp):
    c = float(momentum) / (1.0 + float(momentum))

    def kernel(fr_ref, b_ref, tp_ref, rb_ref, ang_ref):
        # forward STFT: one wide bf16 matmul producing [Re | Im] with f32 accumulation
        r = jnp.dot(fr_ref[...], b_ref[...], preferred_element_type=jnp.float32)
        rb_ref[...] = r                                     # raw rebuilt -> next tprev
        # fast-GL momentum update + unit-magnitude normalization (f32, rsqrt -> EUP)
        a = r - c * tp_ref[...]
        ar = a[:, :fp]
        ai = a[:, fp:]
        inv = jax.lax.rsqrt(ar * ar + ai * ai + 1e-24)
        ang_ref[...] = (a * jnp.concatenate([inv, inv], axis=-1)).astype(ang_ref.dtype)

    return kernel


def analysis_update(frames_rows, fwd_basis, tprev, momentum, *, tm, vmem_limit):
    """frames @ [fwd_re | fwd_im] fused with momentum update + phase normalization."""
    MP, NFP = frames_rows.shape
    FP2 = fwd_basis.shape[1]
    row2 = pl.BlockSpec((tm, FP2), lambda i: (i, 0))
    return pl.pallas_call(
        _make_analysis_kernel(momentum, FP2 // 2),
        out_shape=(jax.ShapeDtypeStruct((MP, FP2), jnp.float32),    # rebuilt (f32)
                   jax.ShapeDtypeStruct((MP, FP2), jnp.bfloat16)),  # angles  (bf16)
        grid=(MP // tm,),
        in_specs=[pl.BlockSpec((tm, NFP), lambda i: (i, 0)),
                  pl.BlockSpec((NFP, FP2), lambda i: (0, 0)),       # VMEM-resident basis
                  row2],
        out_specs=(row2, row2),
        input_output_aliases={2: 0},   # tprev buffer reused for rebuilt
        compiler_params=_compiler_params(vmem_limit),
    )(frames_rows, fwd_basis, tprev)


# ------------------------------ Griffin-Lim ----------------------------------

@functools.partial(jax.jit,
                   static_argnames=("n_fft", "hop_length", "n_iter", "momentum"))
def griffin_lim(S, rand_phase, *, n_fft, hop_length, n_iter, momentum):
    """S: (batch, n_fft//2+1, timesteps) magnitude -> waveform (batch, (T-1)*hop)."""
    B, F, T = S.shape
    hop = hop_length
    pad = n_fft // 2

    # padded/tiled geometry (128-aligned lane dims; 2*FP is a multiple of 256)
    FP = _round_up(F, 128)
    NFP = _round_up(n_fft, 128)
    FP2 = 2 * FP
    M = B * T

    # generation-aware VMEM budget and row-tile selection (double-buffer estimate)
    budget = _vmem_budget()
    fixed = 2 * (FP2 * NFP * 2)                              # resident bf16 basis
    per_row = 2 * (2 * FP2 * 2 + NFP * 4)                    # synth: ss+ang bf16, frames f32
    per_row += 2 * (NFP * 2 + 2 * FP2 * 4 + FP2 * 2)         # analysis: fr bf16, tp+rb f32, ang bf16
    cap_rows = max(8, _round_up((M + 1) // 2, 8))            # aim for >= 2 row blocks (2 TCs)
    TM = 8
    for cand in (1024, 512, 256, 128, 64, 32, 16, 8):
        if cand <= cap_rows and fixed + per_row * cand <= budget:
            TM = cand
            break
    # TODO(synk): for very large n_fft (basis no longer VMEM-resident) fall back to a
    # column-tiled grid with the basis axis outermost instead of full residency.
    MP = _round_up(M, TM)

    # periodic Hann window == scipy.signal.get_window('hann', n_fft, fftbins=True)
    n = jnp.arange(n_fft, dtype=jnp.float32)
    w = 0.5 - 0.5 * jnp.cos(2.0 * jnp.pi * n / n_fft)
    k = jnp.arange(F, dtype=jnp.float32)
    ang = 2.0 * jnp.pi * n[:, None] * k[None, :] / n_fft      # (n_fft, F)
    cosb = jnp.cos(ang)
    sinb = jnp.sin(ang)

    # forward STFT basis (window folded in), concatenated along N: frames @ [Re | Im]
    fwd_re = w[:, None] * cosb
    fwd_im = -(w[:, None] * sinb)
    fwd_re_p = jnp.pad(fwd_re, ((0, NFP - n_fft), (0, FP - F)))
    fwd_im_p = jnp.pad(fwd_im, ((0, NFP - n_fft), (0, FP - F)))
    fwd_basis = jnp.concatenate([fwd_re_p, fwd_im_p], axis=1).astype(jnp.bfloat16)  # (NFP, 2FP)

    # inverse onesided DFT (Hermitian weights) + synthesis window, stacked along K
    weight = jnp.full((F,), 2.0, jnp.float32).at[0].set(1.0).at[F - 1].set(1.0)
    inv_re = (weight[:, None] * cosb.T) * w[None, :] / n_fft
    inv_im = (-(weight[:, None] * sinb.T)) * w[None, :] / n_fft
    inv_re_p = jnp.pad(inv_re, ((0, FP - F), (0, NFP - n_fft)))
    inv_im_p = jnp.pad(inv_im, ((0, FP - F), (0, NFP - n_fft)))
    inv_basis = jnp.concatenate([inv_re_p, inv_im_p], axis=0).astype(jnp.bfloat16)  # (2FP, NFP)

    # overlap-add bookkeeping (center=True istft)
    L_out = (T - 1) * hop
    L_full = n_fft + L_out
    idx = jnp.arange(T)[:, None] * hop + jnp.arange(n_fft)[None, :]   # (T, n_fft)
    pos = idx.reshape(-1)
    env = jnp.zeros((L_full,), jnp.float32).at[pos].add(jnp.tile(w * w, T))
    env_safe = jnp.where(env > 1e-11, env, 1.0)   # zeros only in trimmed edge region
    fold_ok = (n_fft % hop == 0)
    R = n_fft // hop if fold_ok else 0

    def to_rows(x_bft):
        # (B, F, T) -> (MP, FP): frame-major rows, lane-dense bin axis; single entry transpose
        rows = jnp.transpose(x_bft, (0, 2, 1)).reshape(M, F)
        return jnp.pad(rows, ((0, MP - M), (0, FP - F)))

    def ola_and_trim(frames_rows):
        frames = frames_rows[:M, :n_fft].reshape(B, T, n_fft)
        if fold_ok:
            # fold: sum shifted hop-blocks with static slice-adds (no scatter)
            blocks = frames.reshape(B, T, R, hop)
            y = jnp.zeros((B, T + R - 1, hop), jnp.float32)
            for r in range(R):
                y = y.at[:, r:r + T, :].add(blocks[:, :, r, :])
            y = y.reshape(B, L_full)
        else:
            # TODO(synk): general-hop path keeps the scatter-add overlap-add in plain JAX
            y = jnp.zeros((B, L_full), jnp.float32).at[:, pos].add(frames.reshape(B, -1))
        y = y / env_safe[None, :]
        return y[:, pad:pad + L_out]

    def frame_rows(x):
        xp = jnp.pad(x, ((0, 0), (pad, pad)), mode="reflect")          # (B, L_full)
        if fold_ok:
            # unfold via strided reshape + static slices (no gather)
            xb = xp.reshape(B, T + R - 1, hop)
            fr = jnp.stack([xb[:, r:r + T, :] for r in range(R)], axis=2).reshape(M, n_fft)
        else:
            fr = xp[:, idx].reshape(M, n_fft)
        fr = jnp.pad(fr, ((0, MP - M), (0, NFP - n_fft)))
        return fr.astype(jnp.bfloat16)

    # initial state: [Re | Im] packed along the lane axis, matmul operands in bf16
    S_rows = to_rows(S)
    SS_rows = jnp.concatenate([S_rows, S_rows], axis=1).astype(jnp.bfloat16)   # (MP, 2FP)
    phase_rows = to_rows(rand_phase)
    angles = jnp.concatenate([jnp.cos(2.0 * jnp.pi * phase_rows),
                              jnp.sin(2.0 * jnp.pi * phase_rows)],
                             axis=1).astype(jnp.bfloat16)                      # (MP, 2FP)
    tprev = jnp.zeros((MP, FP2), jnp.float32)

    for _ in range(n_iter):
        syn = synth_frames(SS_rows, angles, inv_basis, tm=TM, vmem_limit=budget)
        x = ola_and_trim(syn)
        fr = frame_rows(x)
        tprev, angles = analysis_update(fr, fwd_basis, tprev, momentum,
                                        tm=TM, vmem_limit=budget)

    syn = synth_frames(SS_rows, angles, inv_basis, tm=TM, vmem_limit=budget)
    return ola_and_trim(syn)


# --------------------------------- main --------------------------------------

if __name__ == "__main__":
    n_fft = 64
    hop_length = n_fft // 4          # default hop
    n_iter = 8                       # small iteration count for the example
    momentum = 0.99

    B = 2
    F = n_fft // 2 + 1               # 33
    T = 8                            # timesteps (frames)

    key = jax.random.PRNGKey(0)
    k_mag, k_phase = jax.random.split(key)
    S = jnp.abs(jax.random.normal(k_mag, (B, F, T), dtype=jnp.float32))
    rand_phase = jax.random.normal(k_phase, (B, F, T), dtype=jnp.float32)

    wav = griffin_lim(S, rand_phase, n_fft=n_fft, hop_length=hop_length,
                      n_iter=n_iter, momentum=momentum)
    wav = jax.block_until_ready(wav)

    assert wav.shape == (B, (T - 1) * hop_length), wav.shape
    assert bool(jnp.all(jnp.isfinite(wav)))
    print("KERNEL_OK")
</pallas_src>

<mosaic_0001>
module attributes {stable_mosaic.version = 11 : i64} {
  func.func private @main(%arg0: i32) attributes {dimension_semantics = [#tpu.dimension_semantics<core_parallel>], iteration_bounds = array<i64: 2>, tpu.core_type = #tpu.core_type<sc_scalar_subcore>, window_params = []} {
    return
  }
}

module attributes {stable_mosaic.version = 11 : i64} {
  func.func private @main(%arg0: i32) attributes {dimension_semantics = [#tpu.dimension_semantics<core_parallel>], iteration_bounds = array<i64: 2>, tpu.core_type = #tpu.core_type<sc_scalar_subcore>, window_params = []} {
    return
  }
}

module attributes {stable_mosaic.version = 11 : i64} {
  func.func @_synth_kernel(%arg0: i32, %arg1: memref<8x256xbf16, #tpu.memory_space<vmem>>, %arg2: memref<8x256xbf16, #tpu.memory_space<vmem>>, %arg3: memref<256x128xbf16, #tpu.memory_space<vmem>>, %arg4: memref<8x128xf32, #tpu.memory_space<vmem>>) attributes {dimension_semantics = [#tpu.dimension_semantics<parallel>], iteration_bounds = array<i64: 2>, scalar_prefetch = 0 : i64, scratch_operands = 0 : i64, tpu.core_type = #tpu.core_type<tc>, window_params = [{transform_indices = @transform_0, window_bounds = array<i64: 8, 256>}, {transform_indices = @transform_1, window_bounds = array<i64: 8, 256>}, {pipeline_mode = #tpu.pipeline_mode<synchronous>, transform_indices = @transform_2, window_bounds = array<i64: 256, 128>}, {transform_indices = @transform_3, window_bounds = array<i64: 8, 128>}]} {
    %c0 = arith.constant 0 : index
    %c0_0 = arith.constant 0 : index
    %0 = vector.load %arg1[%c0, %c0_0] : memref<8x256xbf16, #tpu.memory_space<vmem>>, vector<8x256xbf16>
    %c0_1 = arith.constant 0 : index
    %c0_2 = arith.constant 0 : index
    %1 = vector.load %arg2[%c0_1, %c0_2] : memref<8x256xbf16, #tpu.memory_space<vmem>>, vector<8x256xbf16>
    %2 = arith.mulf %0, %1 : vector<8x256xbf16>
    %c0_3 = arith.constant 0 : index
    %c0_4 = arith.constant 0 : index
    %3 = vector.load %arg3[%c0_3, %c0_4] : memref<256x128xbf16, #tpu.memory_space<vmem>>, vector<256x128xbf16>
    %cst = arith.constant dense<0.000000e+00> : vector<8x128xf32>
    %4 = tpu.matmul %2, %3, %cst {dimension_numbers = #tpu.dot_dimension_numbers<[1], [0], [0], [1], [0, 0, 1, 1], [], []>} : vector<8x256xbf16>, vector<256x128xbf16>, vector<8x128xf32> -> vector<8x128xf32>
    %c0_5 = arith.constant 0 : index
    %c0_6 = arith.constant 0 : index
    %5 = vector.load %arg4[%c0_5, %c0_6] : memref<8x128xf32, #tpu.memory_space<vmem>>, vector<8x128xf32>
    tpu.vector_store %arg4[%c0_5, %c0_6], %4 {strides = array<i32>} : memref<8x128xf32, #tpu.memory_space<vmem>>, vector<8x128xf32>,
    return
  }
  func.func @transform_0(%arg0: i32) -> (i32, i32) {
    %c0_i32 = arith.constant 0 : i32
    %c0_i32_0 = arith.constant 0 : i32
    return %arg0, %c0_i32 : i32, i32
  }
  func.func @transform_1(%arg0: i32) -> (i32, i32) {
    %c0_i32 = arith.constant 0 : i32
    %c0_i32_0 = arith.constant 0 : i32
    return %arg0, %c0_i32 : i32, i32
  }
  func.func @transform_2(%arg0: i32) -> (i32, i32) {
    %c0_i32 = arith.constant 0 : i32
    %c0_i32_0 = arith.constant 0 : i32
    %c0_i32_1 = arith.constant 0 : i32
    return %c0_i32, %c0_i32_0 : i32, i32
  }
  func.func @transform_3(%arg0: i32) -> (i32, i32) {
    %c0_i32 = arith.constant 0 : i32
    %c0_i32_0 = arith.constant 0 : i32
    return %arg0, %c0_i32 : i32, i32
  }
}

module attributes {stable_mosaic.version = 11 : i64} {
  func.func @kernel(%arg0: i32, %arg1: memref<8x128xbf16, #tpu.memory_space<vmem>>, %arg2: memref<128x256xbf16, #tpu.memory_space<vmem>>, %arg3: memref<8x256xf32, #tpu.memory_space<vmem>>, %arg4: memref<8x256xf32, #tpu.memory_space<vmem>>, %arg5: memref<8x256xbf16, #tpu.memory_space<vmem>>) attributes {dimension_semantics = [#tpu.dimension_semantics<parallel>], iteration_bounds = array<i64: 2>, scalar_prefetch = 0 : i64, scratch_operands = 0 : i64, tpu.core_type = #tpu.core_type<tc>, window_params = [{transform_indices = @transform_0, window_bounds = array<i64: 8, 128>}, {pipeline_mode = #tpu.pipeline_mode<synchronous>, transform_indices = @transform_1, window_bounds = array<i64: 128, 256>}, {transform_indices = @transform_2, window_bounds = array<i64: 8, 256>}, {transform_indices = @transform_3, window_bounds = array<i64: 8, 256>}, {transform_indices = @transform_4, window_bounds = array<i64: 8, 256>}]} {
    %c0 = arith.constant 0 : index
    %c0_0 = arith.constant 0 : index
    %0 = vector.load %arg1[%c0, %c0_0] : memref<8x128xbf16, #tpu.memory_space<vmem>>, vector<8x128xbf16>
    %c0_1 = arith.constant 0 : index
    %c0_2 = arith.constant 0 : index
    %1 = vector.load %arg2[%c0_1, %c0_2] : memref<128x256xbf16, #tpu.memory_space<vmem>>, vector<128x256xbf16>
    %cst = arith.constant dense<0.000000e+00> : vector<8x256xf32>
    %2 = tpu.matmul %0, %1, %cst {dimension_numbers = #tpu.dot_dimension_numbers<[1], [0], [0], [1], [0, 0, 1, 1], [], []>} : vector<8x128xbf16>, vector<128x256xbf16>, vector<8x256xf32> -> vector<8x256xf32>
    %c0_3 = arith.constant 0 : index
    %c0_4 = arith.constant 0 : index
    %3 = vector.load %arg4[%c0_3, %c0_4] : memref<8x256xf32, #tpu.memory_space<vmem>>, vector<8x256xf32>
    tpu.vector_store %arg4[%c0_3, %c0_4], %2 {strides = array<i32>} : memref<8x256xf32, #tpu.memory_space<vmem>>, vector<8x256xf32>,
    %c0_5 = arith.constant 0 : index
    %c0_6 = arith.constant 0 : index
    %4 = vector.load %arg3[%c0_5, %c0_6] : memref<8x256xf32, #tpu.memory_space<vmem>>, vector<8x256xf32>
    %cst_7 = arith.constant 0.497487426 : f32
    %5 = vector.broadcast %cst_7 : f32 to vector<8x256xf32>
    %6 = arith.mulf %5, %4 : vector<8x256xf32>
    %7 = arith.subf %2, %6 : vector<8x256xf32>
    %8 = vector.extract_strided_slice %7 {offsets = [0, 0], sizes = [8, 128], strides = [1, 1]} : vector<8x256xf32> to vector<8x128xf32>
    %9 = vector.extract_strided_slice %7 {offsets = [0, 128], sizes = [8, 128], strides = [1, 1]} : vector<8x256xf32> to vector<8x128xf32>
    %10 = arith.mulf %8, %8 : vector<8x128xf32>
    %11 = arith.mulf %9, %9 : vector<8x128xf32>
    %12 = arith.addf %10, %11 : vector<8x128xf32>
    %cst_8 = arith.constant 1.000000e-24 : f32
    %13 = vector.broadcast %cst_8 : f32 to vector<8x128xf32>
    %14 = arith.addf %12, %13 : vector<8x128xf32>
    %15 = math.rsqrt %14 : vector<8x128xf32>
    %16 = tpu.concatenate %15, %15 in 1 : vector<8x128xf32>, vector<8x128xf32> -> vector<8x256xf32>
    %17 = arith.mulf %7, %16 : vector<8x256xf32>
    %18 = arith.truncf %17 : vector<8x256xf32> to vector<8x256xbf16>
    %c0_9 = arith.constant 0 : index
    %c0_10 = arith.constant 0 : index
    %19 = vector.load %arg5[%c0_9, %c0_10] : memref<8x256xbf16, #tpu.memory_space<vmem>>, vector<8x256xbf16>
    tpu.vector_store %arg5[%c0_9, %c0_10], %18 {strides = array<i32>} : memref<8x256xbf16, #tpu.memory_space<vmem>>, vector<8x256xbf16>,
    return
  }
  func.func @transform_0(%arg0: i32) -> (i32, i32) {
    %c0_i32 = arith.constant 0 : i32
    %c0_i32_0 = arith.constant 0 : i32
    return %arg0, %c0_i32 : i32, i32
  }
  func.func @transform_1(%arg0: i32) -> (i32, i32) {
    %c0_i32 = arith.constant 0 : i32
    %c0_i32_0 = arith.constant 0 : i32
    %c0_i32_1 = arith.constant 0 : i32
    return %c0_i32, %c0_i32_0 : i32, i32
  }
  func.func @transform_2(%arg0: i32) -> (i32, i32) {
    %c0_i32 = arith.constant 0 : i32
    %c0_i32_0 = arith.constant 0 : i32
    return %arg0, %c0_i32 : i32, i32
  }
  func.func @transform_3(%arg0: i32) -> (i32, i32) {
    %c0_i32 = arith.constant 0 : i32
    %c0_i32_0 = arith.constant 0 : i32
    return %arg0, %c0_i32 : i32, i32
  }
  func.func @transform_4(%arg0: i32) -> (i32, i32) {
    %c0_i32 = arith.constant 0 : i32
    %c0_i32_0 = arith.constant 0 : i32
    return %arg0, %c0_i32 : i32, i32
  }
}

</mosaic_0001>

<bundles_post_ra>
// kernel: tile.8
= control target key start
LH: loop header
LB: loop body
LE: loop exit
PB: predicated region body
PF: predicated region fallthrough
CT: control target
= control target key end

     0   :  { %s22_s0 = inlined_call_operand.vmem [shape: f32[64], index: 0, kind: input, shape index: {}]   ;;  %s23_s1 = inlined_call_operand.vmem [shape: f32[8,64], index: 1, kind: output, shape index: {}]  }
   0x1   :  { %v4_v0 = vld [vmem:[%s22_s0] ss:$0 sm:$0xff] }
   0x2   :  { %5 = vst [vmem:[%s23_s1] sm:$0xff] %v4_v0 }

// kernel: griffin_lim.17
= control target key start
LH: loop header
LB: loop body
LE: loop exit
PB: predicated region body
PF: predicated region fallthrough
CT: control target
= control target key end

     0   :  { %s540_s12 = smov 0   ;;  %s613_s0 = inlined_call_operand.vmem [shape: bf16[16,256], index: 0, kind: input, shape index: {}]   ;;  %s614_s1 = inlined_call_operand.vmem [shape: bf16[16,256], index: 1, kind: input, shape index: {}]   ;;  %s615_s2 = inlined_call_operand.vmem [shape: bf16[256,128], index: 2, kind: input, shape index: {}]   ;;  %s616_s3 = inlined_call_operand.vmem [shape: f32[16,128], index: 3, kind: output, shape index: {}]  }
   0x1 LB: > { %s434_s13 = sadd.s32 4294967295, %s518_s12   ;;  %p438_p0 = scmp.ge.s32.totalorder %s518_s12, 1  ;;  %s518_s12 = sphi %s540_s12, %s13_s12  }
   0x2   : > { %p147_p1 = scmp.lt.s32.totalorder %s518_s12, 3 }
   0x4   : > { %p148_p2 = pnand %p438_p0, %p147_p1 }
   0x5   : > { %v496_v0 = vld [vmem:[%s615_s2 + $0x40] sm:$0xff] (!%p148_p2)   ;;  %v498_v2 = vld [vmem:[%s615_s2 + $0x48] sm:$0xff] (!%p148_p2)   ;;  %p175_p3 = scmp.lt.s32.totalorder (!%p148_p2), %s434_s13, 1  ;;  %v500_v4 = vld [vmem:[%s615_s2 + $0x50] sm:$0xff] (!%p148_p2)  }
   0x6   : > { %151 = sbr.rel (%p148_p2) target bundleno = 254 (0xfe), region = 32  ;;  %v497_v1 = vld [vmem:[%s615_s2] sm:$0xff] (!%p148_p2)   ;;  %466 = vmatprep.subr.bf16.mxu0 (!%p148_p2), %v496_v0  ;;  %v499_v3 = vld [vmem:[%s615_s2 + $0x8] sm:$0xff] (!%p148_p2)   ;;  %v501_v5 = vld [vmem:[%s615_s2 + $0x10] sm:$0xff] (!%p148_p2)  }
   0x7   : > { %467 = vmatpush3.bf16.msra.mxu0 (!%p148_p2), %v497_v1  ;;  %v502_v6 = vld [vmem:[%s615_s2 + $0x58] sm:$0xff] (!%p148_p2)   ;;  %v504_v8 = vld [vmem:[%s615_s2 + $0x60] sm:$0xff] (!%p148_p2)   ;;  %v506_v10 = vld [vmem:[%s615_s2 + $0x68] sm:$0xff] (!%p148_p2)  }
   0x8   : > { %468 = vmatprep.subr.bf16.mxu0 (!%p148_p2), %v498_v2  ;;  %v503_v7 = vld [vmem:[%s615_s2 + $0x18] sm:$0xff] (!%p148_p2)   ;;  %v505_v9 = vld [vmem:[%s615_s2 + $0x20] sm:$0xff] (!%p148_p2)   ;;  %v507_v14 = vld [vmem:[%s615_s2 + $0x28] sm:$0xff] (!%p148_p2)  }
   0x9   : > { %v508_v16 = vld [vmem:[%s615_s2 + $0x70] sm:$0xff] (!%p148_p2)   ;;  %v510_v18 = vld [vmem:[%s615_s2 + $0x78] sm:$0xff] (!%p148_p2)  }
   0xa   : > { %v509_v17 = vld [vmem:[%s615_s2 + $0x30] sm:$0xff] (!%p148_p2)   ;;  %v511_v19 = vld [vmem:[%s615_s2 + $0x38] sm:$0xff] (!%p148_p2)  }
   0xb   : > { %469 = vmatpush3.bf16.msra.mxu0 (!%p148_p2), %v499_v3 }
   0xc   : > { %470 = vmatprep.subr.bf16.mxu0 (!%p148_p2), %v500_v4 }
   0xd   : > { %s618_s13 = smov (!%p175_p3, %s434_s13), 1 }
   0xe   : > { %s569_s28 = sshll.u32 %s618_s13, 3 }
   0xf   : > { %471 = vmatpush3.bf16.msra.mxu0 %v501_v5  ;;  %s179_s8 = scalar_lea.vmem %s613_s0, %s569_s28  ;;  %s184_s11 = scalar_lea.vmem %s614_s1, %s569_s28 }
  0x10   : > { %472 = vmatprep.subr.bf16.mxu0 %v502_v6  ;;  %v190_v11 = vld [vmem:[%s179_s8] sm:$0xff]  ;;  %s188_s30 = scalar_lea.vmem %s616_s3, %s569_s28 }
  0x11   : > { %v191_v12 = vld [vmem:[%s184_s11] sm:$0xff] }
  0x12   : > { %v192_v13 = vmul.bf16 %v191_v12, %v190_v11 }
  0x13   : > { %473 = vmatpush3.bf16.msra.mxu0 %v503_v7 }
  0x14   : > { %474 = vmatprep.subr.bf16.mxu0 %v504_v8  ;;  %v445_v15 = vcombine.high %v192_v13, %v192_v13  ;;  %v444_v20 = vcombine.low %v192_v13, %v192_v13 }
  0x16   : > { %360 = vmatprep.mubr.bf16.mxu0 %v445_v15 }
  0x17   : > { %475 = vmatpush3.bf16.msra.mxu0 %v505_v9 }
  0x18   : > { %476 = vmatprep.subr.bf16.mxu0 %v506_v10 }
  0x1b   : > { %477 = vmatpush3.bf16.msra.mxu0 %v507_v14 }
  0x1c   : > { %478 = vmatprep.subr.bf16.mxu0 %v508_v16 }
  0x1f   : > { %479 = vmatpush3.bf16.msra.mxu0 %v509_v17 }
  0x20   : > { %480 = vmatprep.subr.bf16.mxu0 %v510_v18 }
  0x23   : > { %481 = vmatpush3.bf16.msra.mxu0 %v511_v19 }
  0x26   : > { %361 = vmatmul.mubr.bf16.vlgmr.msra.gmra.mrb[0].mxu0 %v444_v20 }
  0xf9   : > { %v482_v21 = vpop.f32.mrb[0].mxu0 }
  0xfa   : > { %v483_v22 = vpop.f32.mrb[1].mxu0 }
  0xfb   : > { %v484_v23 = vadd.f32 %v483_v22, %v482_v21  ;;  %v485_v24 = vpop.f32.mrb[2].mxu0 }
  0xfc   : > { %v486_v25 = vpop.f32.mrb[3].mxu0 }
  0xfd   : > { %368 = vst [vmem:[%s188_s30] sm:$0xff] %v484_v23 }
  0xfe PF: > { %s13_s12 = sadd.s32 1, %s518_s12  }
  0xff   : > { %p10_p4 = scmp.ge.s32.totalorder %s13_s12, 4  }
 0x101   :  { %12 = sbr.rel (!%p10_p4) target bundleno = 1 (0x1), region = 65 }

// kernel: griffin_lim.18
= control target key start
LH: loop header
LB: loop body
LE: loop exit
PB: predicated region body
PF: predicated region fallthrough
CT: control target
= control target key end

     0   :  { %s595_s15 = smov 0   ;;  %s675_s0 = inlined_call_operand.vmem [shape: bf16[16,128], index: 0, kind: input, shape index: {}]   ;;  %s676_s1 = inlined_call_operand.vmem [shape: bf16[128,256], index: 1, kind: input, shape index: {}]   ;;  %s677_s2 = inlined_call_operand.vmem [shape: f32[16,256], index: 2, kind: input, shape index: {}, may-alias: {2,3}]   ;;  %s678_s3 = inlined_call_operand.vmem [shape: f32[16,256], index: 3, kind: output, shape index: {0}, may-alias: {2,3}]   ;;  %s679_s4 = inlined_call_operand.vmem [shape: bf16[16,256], index: 4, kind: output, shape index: {1}]  }
   0x1 LB: > { %s491_s16 = sadd.s32 4294967295, %s567_s15   ;;  %p495_p0 = scmp.ge.s32.totalorder %s567_s15, 1  ;;  %s567_s15 = sphi %s595_s15, %s15_s15  }
   0x2   : > { %p174_p1 = scmp.lt.s32.totalorder %s567_s15, 3 }
   0x4   : > { %p175_p2 = pnand %p495_p0, %p174_p1 }
   0x5   : > { %v535_v0 = vld [vmem:[%s676_s1 + $0x4] ss:$8 sps:$4 sm:$0xff] (!%p175_p2)   ;;  %v537_v1 = vld [vmem:[%s676_s1] ss:$8 sps:$4 sm:$0xff] (!%p175_p2)   ;;  %v569_v2 = vmov (!%p175_p2), 0   ;;  %p209_p3 = scmp.lt.s32.totalorder (!%p175_p2), %s491_s16, 1 }
   0x6   : > { %178 = sbr.rel (%p175_p2) target bundleno = 285 (0x11d), region = 32  ;;  %358 = vmatprep.mubr.bf16.mxu0 (!%p175_p2), %v569_v2  ;;  %326 = vmatprep.subr.bf16.mxu0 (!%p175_p2), %v535_v0  ;;  %v538_v3 = vld [vmem:[%s676_s1 + $0x14] ss:$8 sps:$4 sm:$0xff] (!%p175_p2)   ;;  %v540_v4 = vld [vmem:[%s676_s1 + $0x10] ss:$8 sps:$4 sm:$0xff] (!%p175_p2)  }
   0x7   : > { %327 = vmatpush1.bf16.msra.mxu0 (!%p175_p2), %v537_v1  ;;  %v541_v5 = vld [vmem:[%s676_s1 + $0x24] ss:$8 sps:$4 sm:$0xff] (!%p175_p2)   ;;  %v543_v6 = vld [vmem:[%s676_s1 + $0x20] ss:$8 sps:$4 sm:$0xff] (!%p175_p2)   ;;  %v544_v7 = vld [vmem:[%s676_s1 + $0x34] ss:$8 sps:$4 sm:$0xff] (!%p175_p2)  }
   0x8   : > { %328 = vmatprep.subr.bf16.mxu0 (!%p175_p2), %v538_v3  ;;  %v546_v8 = vld [vmem:[%s676_s1 + $0x30] ss:$8 sps:$4 sm:$0xff] (!%p175_p2)   ;;  %v547_v9 = vld [vmem:[%s676_s1 + $0x44] ss:$8 sps:$4 sm:$0xff] (!%p175_p2)   ;;  %v549_v10 = vld [vmem:[%s676_s1 + $0x40] ss:$8 sps:$4 sm:$0xff] (!%p175_p2)  }
   0x9   : > { %v550_v11 = vld [vmem:[%s676_s1 + $0x54] ss:$8 sps:$4 sm:$0xff] (!%p175_p2)   ;;  %v552_v12 = vld [vmem:[%s676_s1 + $0x50] ss:$8 sps:$4 sm:$0xff] (!%p175_p2)   ;;  %v553_v13 = vld [vmem:[%s676_s1 + $0x64] ss:$8 sps:$4 sm:$0xff] (!%p175_p2)  }
   0xa   : > { %v555_v14 = vld [vmem:[%s676_s1 + $0x60] ss:$8 sps:$4 sm:$0xff] (!%p175_p2)   ;;  %v556_v15 = vld [vmem:[%s676_s1 + $0x74] ss:$8 sps:$4 sm:$0xff] (!%p175_p2)   ;;  %v558_v16 = vld [vmem:[%s676_s1 + $0x70] ss:$8 sps:$4 sm:$0xff] (!%p175_p2)  }
   0xb   : > { %329 = vmatpush1.bf16.msra.mxu0 (!%p175_p2), %v540_v4 }
   0xc   : > { %330 = vmatprep.subr.bf16.mxu0 (!%p175_p2), %v541_v5 }
   0xd   : > { %s681_s16 = smov (!%p209_p3, %s491_s16), 1 }
   0xe   : > { %s496_s23 = sshll.u32 %s681_s16, 2  ;;  %s522_s29 = sshll.u32 %s681_s16, 4 }
   0xf   : > { %331 = vmatpush1.bf16.msra.mxu0 %v543_v6  ;;  %s212_s28 = scalar_lea.vmem %s675_s0, %s496_s23  ;;  %s222_s6 = scalar_lea.vmem %s678_s3, %s522_s29 }
  0x10   : > { %332 = vmatprep.subr.bf16.mxu0 %v544_v7  ;;  %v229_v17 = vld [vmem:[%s212_s28] sm:$0xf]  ;;  %s217_s9 = scalar_lea.vmem %s677_s2, %s522_s29  ;;  %s524_s10 = sshll.u32 %s681_s16, 3 }
  0x11   : > { %s227_s13 = scalar_lea.vmem %s679_s4, %s524_s10 }
  0x13   : > { %333 = vmatpush1.bf16.msra.mxu0 %v546_v8 }
  0x14   : > { %334 = vmatprep.subr.bf16.mxu0 %v547_v9 }
  0x17   : > { %335 = vmatpush1.bf16.msra.mxu0 %v549_v10 }
  0x18   : > { %336 = vmatprep.subr.bf16.mxu0 %v550_v11 }
  0x1b   : > { %337 = vmatpush1.bf16.msra.mxu0 %v552_v12 }
  0x1c   : > { %338 = vmatprep.subr.bf16.mxu0 %v553_v13 }
  0x1f   : > { %339 = vmatpush1.bf16.msra.mxu0 %v555_v14 }
  0x20   : > { %340 = vmatprep.subr.bf16.mxu0 %v556_v15 }
  0x23   : > { %341 = vmatpush1.bf16.msra.mxu0 %v558_v16 }
  0x26   : > { %359 = vmatmul.mubr.bf16.vlgmr.msra.gmra.mrb[0].mxu0 %v229_v17 }
  0xf9   : > { %v360_v18 = vpop.f32.mrb[0].mxu0 }
  0xfa   : > { %367 = vst [vmem:[%s222_s6] sm:$0xff] %v360_v18  ;;  %v362_v19 = vpop.f32.mrb[1].mxu0 }
  0xfb   : > { %368 = vst [vmem:[%s222_s6 + $0x8] sm:$0xff] %v362_v19  ;;  %v364_v20 = vpop.f32.mrb[2].mxu0 }
  0xfc   : > { %v365_v21 = vpop.f32.mrb[3].mxu0 }
 0x102   : > { %v369_v22 = vld [vmem:[%s217_s9] sm:$0xff]  ;;  %v370_v23 = vld [vmem:[%s217_s9 + $0x8] sm:$0xff] }
 0x103   : > { %v371_v24 = vmul.f32 0.49748743, %v369_v22  ;;  %v372_v25 = vmul.f32 0.49748743, %v370_v23 }
 0x105   : > { %v373_v26 = vsub.f32 %v360_v18, %v371_v24  ;;  %v374_v27 = vsub.f32 %v362_v19, %v372_v25 }
 0x107   : > { %v375_v28 = vmul.f32 %v373_v26, %v373_v26  ;;  %v376_v29 = vmul.f32 %v374_v27, %v374_v27 }
 0x109   : > { %v377_v30 = vadd.f32 %v376_v29, %v375_v28 }
 0x10b   : > { %v378_v31 = vadd.f32 1e-24, %v377_v30 }
 0x10d   : > { %559 = vrsqrt.f32 %v378_v31 }
 0x117   : > { %v560_v32 = vpop.eup %559 }
 0x118   : > { %v380_v33 = vmul.f32 %v560_v32, %v373_v26  ;;  %v381_v34 = vmul.f32 %v560_v32, %v374_v27 }
 0x11a   : > { %v525_v35 = vpack.c.bf16 %v381_v34, %v380_v33 }
 0x11c   : > { %390 = vst [vmem:[%s227_s13] sm:$0xff] %v525_v35 }
 0x11d PF: > { %s15_s15 = sadd.s32 1, %s567_s15  }
 0x11e   : > { %p12_p4 = scmp.ge.s32.totalorder %s15_s15, 4  }
 0x120   :  { %14 = sbr.rel (!%p12_p4) target bundleno = 1 (0x1), region = 77 }

</bundles_post_ra>
